<compile_context>
chip_gen: v7x
topology: tpu7x:2x2x1
jax: 0.10.0
libtpu: 0.0.40
codegen_flags: <defaults>
</compile_context>

<pallas_src>
import functools

import jax
import jax.numpy as jnp
from jax.experimental import pallas as pl
from jax.experimental.pallas import tpu as pltpu

# ----------------------------- config (cfg.*) ------------------------------
TEMP = 0.05            # cfg.TEST.TEMP
GRID_SIZE = 2          # cfg.MODEL.GRID_SIZE
GRID_SIZE_REF = 2      # cfg.MODEL.GRID_SIZE_REF
CLS_NUM = 16           # key feature channels (self.cls_num)
OHEM_RANGE = (0.0, 1.0)

# 32 MiB keeps headroom on v7x's 64 MiB physical VMEM while matching the
# v5e/v6e scoped default.
_VMEM_LIMIT = 32 * 1024 * 1024


def _round_up(x, m):
    return (x + m - 1) // m * m


def _lane_tile(P, pref=512):
    """Largest multiple of 128 <= pref that divides P; else the full axis."""
    if P % 128 != 0:
        return P
    t = min(pref, P)
    t -= t % 128
    if t == 0:
        t = 128
    while P % t:
        t -= 128
    return t


# --------------------- Pallas kernel 1: similarity matmul -------------------
def _qk_vals_kernel(q_ref, k_ref, o_ref, *, scale):
    # q: (Nq, K) bf16, k: (K, tn) bf16 -> (Nq, tn) f32 (lane-dense store).
    acc = jnp.dot(q_ref[...], k_ref[0], preferred_element_type=jnp.float32)
    if scale != 1.0:                       # keep the 1/TEMP scale in f32
        acc = acc * scale
    o_ref[0] = acc


def pallas_qk_vals(q, kbat, scale=1.0, tn_pref=512):
    """Batched similarity: out[b] = (q @ kbat[b]) * scale.

    q:    [Nq, K]     (cast to bf16)
    kbat: [Bb, K, P]  (cast to bf16, P = pixels in lanes)
    out:  [Bb, Nq, P] float32
    """
    Nq, K = q.shape
    Bb, K2, P = kbat.shape
    assert K == K2
    tn = _lane_tile(P, tn_pref)
    return pl.pallas_call(
        functools.partial(_qk_vals_kernel, scale=float(scale)),
        out_shape=jax.ShapeDtypeStruct((Bb, Nq, P), jnp.float32),
        grid=(Bb, P // tn),
        in_specs=[pl.BlockSpec((Nq, K), lambda b, j: (0, 0)),
                  pl.BlockSpec((1, K, tn), lambda b, j: (b, 0, j))],
        out_specs=pl.BlockSpec((1, Nq, tn), lambda b, j: (b, 0, j)),
        compiler_params=pltpu.CompilerParams(
            dimension_semantics=("parallel", "parallel"),
            vmem_limit_bytes=_VMEM_LIMIT),
    )(q.astype(jnp.bfloat16), kbat.astype(jnp.bfloat16))


# ------------------ Pallas kernel 2: class-major softmax CE ------------------
def _softmax_ce_cm_kernel(x_ref, lab_ref, o_ref):
    # logits block (C, tn) class-major; labels (1, tn) int32; loss (1, tn).
    x = x_ref[0].astype(jnp.float32)
    lab = lab_ref[0]
    m = jnp.max(x, axis=0, keepdims=True)
    lse = jnp.log(jnp.sum(jnp.exp(x - m), axis=0, keepdims=True)) + m
    cls = jax.lax.broadcasted_iota(jnp.int32, x.shape, 0)
    tgt = jnp.sum(jnp.where(cls == lab, x, 0.0), axis=0, keepdims=True)
    o_ref[0] = lse - tgt


def pallas_softmax_ce(logits_cm, labels, tn_pref=512):
    """Row-wise softmax cross-entropy on class-major logits.

    logits_cm: [Bc, C, P] float32 (classes = sublanes, pixels = lanes)
    labels:    [Bc, 1, P] int32
    returns:   [Bc, 1, P] float32 per-pixel loss (lane-dense output)
    """
    Bc, C, P = logits_cm.shape
    tn = _lane_tile(P, tn_pref)
    return pl.pallas_call(
        _softmax_ce_cm_kernel,
        out_shape=jax.ShapeDtypeStruct((Bc, 1, P), jnp.float32),
        grid=(Bc, P // tn),
        in_specs=[pl.BlockSpec((1, C, tn), lambda b, j: (b, 0, j)),
                  pl.BlockSpec((1, 1, tn), lambda b, j: (b, 0, j))],
        out_specs=pl.BlockSpec((1, 1, tn), lambda b, j: (b, 0, j)),
        compiler_params=pltpu.CompilerParams(
            dimension_semantics=("parallel", "parallel"),
            vmem_limit_bytes=_VMEM_LIMIT),
    )(logits_cm.astype(jnp.float32), labels.astype(jnp.int32))


# ------------- Pallas kernel 3: conv stem matmul + bias + L2 norm -----------
def _conv_stem_kernel(p_ref, w_ref, b_ref, o_ref):
    # p: (1, 9*Cin, tn) bf16 im2col block; w: (CLS, 9*Cin) bf16; b: (CLS,1) f32
    acc = jnp.dot(w_ref[...], p_ref[0], preferred_element_type=jnp.float32)
    acc = acc + b_ref[...]                                 # bias bcast (CLS,1)
    ssq = jnp.sum(acc * acc, axis=0, keepdims=True)        # (1, tn)
    inv = 1.0 / (jnp.sqrt(ssq) + 1e-8)                     # == out/(||out||+1e-8)
    o_ref[0] = (acc * inv).astype(o_ref.dtype)


def convlocal(params, x, tn_pref=512):
    """3x3 conv (pad=1) + bias + per-pixel L2-norm; matmul+epilogue fused.

    x: [N, 3, H, W]  ->  [N, CLS_NUM, H, W]  (bfloat16 key features)
    """
    N, Cin, H, W = x.shape
    P = H * W
    Pr = _round_up(P, 128)

    # im2col in plain JAX: 9 shifted views of the zero-padded image stacked on
    # the tiny sublane axis -> [N, 9*Cin, Pr]; all heavy math is in the kernel.
    xp = jnp.pad(x.astype(jnp.bfloat16), ((0, 0), (0, 0), (1, 1), (1, 1)))
    taps = [xp[:, :, kh:kh + H, kw:kw + W]
            for kh in range(3) for kw in range(3)]
    patches = jnp.stack(taps, axis=1).reshape(N, 9 * Cin, P)
    patches = jnp.pad(patches, ((0, 0), (0, 0), (0, Pr - P)))

    # weight [CLS, Cin, 3, 3] -> [CLS, (kh*3+kw)*Cin + cin] matching tap order
    w2 = params["conv_w"].transpose(0, 2, 3, 1).reshape(
        CLS_NUM, 9 * Cin).astype(jnp.bfloat16)
    bias = params["conv_b"].reshape(CLS_NUM, 1).astype(jnp.float32)

    tn = _lane_tile(Pr, tn_pref)
    out = pl.pallas_call(
        _conv_stem_kernel,
        out_shape=jax.ShapeDtypeStruct((N, CLS_NUM, Pr), jnp.bfloat16),
        grid=(N, Pr // tn),
        in_specs=[pl.BlockSpec((1, 9 * Cin, tn), lambda n, j: (n, 0, j)),
                  pl.BlockSpec((CLS_NUM, 9 * Cin), lambda n, j: (0, 0)),
                  pl.BlockSpec((CLS_NUM, 1), lambda n, j: (0, 0))],
        out_specs=pl.BlockSpec((1, CLS_NUM, tn), lambda n, j: (n, 0, j)),
        compiler_params=pltpu.CompilerParams(
            dimension_semantics=("parallel", "parallel"),
            vmem_limit_bytes=_VMEM_LIMIT),
    )(patches, w2, bias)
    return out[:, :, :P].reshape(N, CLS_NUM, H, W)


def init_params(key):
    kw, kb = jax.random.split(key)
    return {
        "conv_w": 0.1 * jax.random.normal(kw, (CLS_NUM, 3, 3, 3), jnp.float32),
        "conv_b": 0.01 * jax.random.normal(kb, (CLS_NUM,), jnp.float32),
    }


# ------------------------- glue ops (pure indexing) -------------------------
def align(x, theta):
    """F.affine_grid + F.grid_sample(mode='nearest', align_corners=False)."""
    N, C, H, W = x.shape
    xs = (2.0 * jnp.arange(W) + 1.0) / W - 1.0
    ys = (2.0 * jnp.arange(H) + 1.0) / H - 1.0
    gx, gy = jnp.meshgrid(xs, ys)                           # [H, W]
    base = jnp.stack([gx, gy, jnp.ones_like(gx)], axis=-1)  # [H, W, 3]
    grid = jnp.einsum("nij,hwj->nhwi", theta, base)         # [N, H, W, 2]
    ix = ((grid[..., 0] + 1.0) * W - 1.0) / 2.0
    iy = ((grid[..., 1] + 1.0) * H - 1.0) / 2.0
    ixn = jnp.round(ix).astype(jnp.int32)
    iyn = jnp.round(iy).astype(jnp.int32)
    valid = ((ixn >= 0) & (ixn < W) & (iyn >= 0) & (iyn < H)).astype(x.dtype)
    ixc = jnp.clip(ixn, 0, W - 1)
    iyc = jnp.clip(iyn, 0, H - 1)
    n_idx = jnp.arange(N)[:, None, None]
    out = x[n_idx, :, iyc, ixc]                             # [N, H, W, C]
    out = out * valid[..., None]
    return out.transpose(0, 3, 1, 2)


def fetch_first(x1, x2, T):
    c, h, w = x1.shape[1:]
    x1 = x1.reshape(-1, T + 1, c, h, w)
    x2 = x2.reshape(-1, T - 1, c, h, w)
    x2 = jnp.concatenate([x1[:, -1:], x2], axis=1)
    x1 = x1[:, :-1]
    return x1.reshape(-1, c, h, w), x2.reshape(-1, c, h, w)


def sample_index(B, H, W, N, rng):
    xs, ys = W // N, H // N
    kx, ky = jax.random.split(rng)
    x_s = jnp.arange(0, W, xs).reshape(1, 1, N)
    y_s = jnp.arange(0, H, ys).reshape(1, N, 1)
    x_s = x_s + jax.random.randint(kx, (B, 1, 1), 0, xs)
    y_s = y_s + jax.random.randint(ky, (B, 1, 1), 0, ys)
    return x_s + y_s * W                                    # [B, N, N]


def sample_from(x, index, T):
    """Gather anchor features from frame t=0 of each clip (indices < H*W).

    x: [B*T, K, H, W]; index: [B, N, N] -> [B*N*N, K]
    """
    BT, K, H, W = x.shape
    B = BT // T
    x0 = x.reshape(B, T, K, H * W)[:, 0]                    # [B, K, HW]
    idx = index.reshape(B, 1, -1)                           # [B, 1, NN]
    g = jnp.take_along_axis(x0, idx, axis=2)                # [B, K, NN]
    return g.transpose(0, 2, 1).reshape(-1, K)


def pseudo_labels(vals_pseudo, T):
    """argmax(softmax(vals) * eye_mask, axis=1): softmax is monotone per pixel,
    so this equals an argmax over the eye-masked logits (no exp pass needed)."""
    BT, C, H, W = vals_pseudo.shape
    B = BT // T
    N = GRID_SIZE ** 2
    eye = jnp.eye(B, dtype=bool)
    eye = jnp.broadcast_to(eye[:, :, None], (B, B, N)).reshape(B, B * N)
    eye = jnp.broadcast_to(eye[:, None, :], (B, T, B * N)).reshape(B * T, B * N)
    masked = jnp.where(eye[:, :, None, None], vals_pseudo, -jnp.inf)
    return jnp.argmax(masked, axis=1).astype(jnp.int32)


def ohem_mean(v):
    v = jnp.sort(v)
    i1 = int(v.shape[0] * OHEM_RANGE[0])
    i2 = int(v.shape[0] * OHEM_RANGE[1])
    return jnp.mean(v[i1:i2])


# ------------------------------ model pieces -------------------------------
def cluster_grid(k1, k2, aff1, aff2, T, rng):
    BT, K, H, W = k1.shape
    B = BT // T
    index = sample_index(B, H, W, GRID_SIZE, rng)
    query1 = sample_from(k1, index, T)                      # [B*GS*GS, K] bf16
    # key_val: the kernel output is already the NCHW [BT, Nq, H*W] layout, so
    # the flatten()/unflatten() transposes of the reference are not needed.
    vals_soft = pallas_qk_vals(query1, k1.reshape(BT, K, H * W),
                               scale=1.0 / TEMP).reshape(BT, -1, H, W)
    vals_pseudo = pallas_qk_vals(query1, k2.reshape(BT, K, H * W),
                                 scale=1.0 / TEMP).reshape(BT, -1, H, W)
    vals_soft = align(vals_soft, aff1)
    vals_pseudo = align(vals_pseudo, aff2)
    pseudo = pseudo_labels(vals_pseudo, T)
    return vals_soft, pseudo, index


def ref_loss(x, y, N, rng):
    B, K, h, w = x.shape
    index = sample_index(B, h, w, N, rng)
    x1 = sample_from(x, index, T=1)                         # [B*N*N, K]
    y1 = sample_from(y, index, T=1)
    # class-major logits: ((x1 @ y1.T)/TEMP).T == (y1 @ x1.T)/TEMP
    logits_cm = pallas_qk_vals(y1, jnp.transpose(x1)[None], scale=1.0 / TEMP)
    M = logits_cm.shape[-1]
    labels = jnp.arange(M, dtype=jnp.int32).reshape(1, 1, M)
    err = pallas_softmax_ce(logits_cm, labels)
    return ohem_mean(err.reshape(-1))


def ce_loss(vals, pseudo, T):
    """Per-pixel CE against pseudo labels, computed only on the t>=1 frames
    that the reference actually keeps (errors[:, 1:])."""
    BT, C, H, W = vals.shape
    B = BT // T
    v = vals.reshape(B, T, C, H, W)[:, 1:].reshape(B * (T - 1), C, H * W)
    p = pseudo.reshape(B, T, H, W)[:, 1:].reshape(B * (T - 1), 1, H * W)
    err = pallas_softmax_ce(v, p)                           # [B*(T-1), 1, HW]
    return ohem_mean(err.reshape(-1))


def vit_forward(params, frames1_d, frames2_d, affines_d, affine_src_d, rng):
    B, T = frames1_d.shape[:2]
    images1 = jnp.concatenate([frames1_d, frames2_d[:, ::T]], axis=1)
    images1 = images1.reshape((-1,) + images1.shape[2:])     # [B*(T+1),3,H,W]
    images2 = frames2_d[:, 1:].reshape((-1,) + frames2_d.shape[2:])
    aff = affines_d.reshape(-1, 2, 3)
    aff_src = affine_src_d.reshape(-1, 2, 3)

    key1_cls = convlocal(params, images1)
    key2_cls = jax.lax.stop_gradient(convlocal(params, images2))  # torch.no_grad
    key1_cls, key2_cls = fetch_first(key1_cls, key2_cls, T)

    rng1, rng2 = jax.random.split(rng)
    vals, pseudo, _ = cluster_grid(key1_cls, key2_cls, aff, aff_src, T, rng1)

    # _ref_loss only looks at every T-th frame -> slice BEFORE the align gather
    key1_al = align(key1_cls[::T], aff[::T])
    key2_al = align(key2_cls[::T], aff_src[::T])
    loss_cross_key = ref_loss(key1_al, key2_al, GRID_SIZE_REF, rng2)
    loss_temp = ce_loss(vals, pseudo, T)
    return {"loss_dul": 0.1 * loss_cross_key + loss_temp}


# ---------------------------------- main ------------------------------------
if __name__ == "__main__":
    key = jax.random.PRNGKey(0)
    B, T, C, H, W = 2, 2, 3, 8, 8
    k1, k2, k3, k4, k5 = jax.random.split(key, 5)
    frames1 = jax.random.normal(k1, (B, T, C, H, W), jnp.float32)
    frames2 = jax.random.normal(k2, (B, T, C, H, W), jnp.float32)
    ident = jnp.tile(jnp.array([[1.0, 0.0, 0.0], [0.0, 1.0, 0.0]]),
                     (B, T, 1, 1))
    affines = ident + 0.05 * jax.random.normal(k3, (B, T, 2, 3), jnp.float32)
    affine_src = ident + 0.05 * jax.random.normal(k4, (B, T, 2, 3), jnp.float32)
    params = init_params(k5)

    fwd = jax.jit(vit_forward)
    result = fwd(params, frames1, frames2, affines, affine_src,
                 jax.random.PRNGKey(1))
    jax.block_until_ready(result["loss_dul"])
    print("KERNEL_OK")
</pallas_src>

<mosaic_0001>
module attributes {stable_mosaic.version = 11 : i64} {
  func.func @_conv_stem_kernel(%arg0: i32, %arg1: i32, %arg2: memref<1x27x128xbf16, #tpu.memory_space<vmem>>, %arg3: memref<16x27xbf16, #tpu.memory_space<vmem>>, %arg4: memref<16x1xf32, #tpu.memory_space<vmem>>, %arg5: memref<1x16x128xbf16, #tpu.memory_space<vmem>>) attributes {dimension_semantics = [#tpu.dimension_semantics<parallel>, #tpu.dimension_semantics<parallel>], iteration_bounds = array<i64: 2, 1>, scalar_prefetch = 0 : i64, scratch_operands = 0 : i64, tpu.core_type = #tpu.core_type<tc>, window_params = [{transform_indices = @transform_0, window_bounds = array<i64: 1, 27, 128>}, {pipeline_mode = #tpu.pipeline_mode<synchronous>, transform_indices = @transform_1, window_bounds = array<i64: 16, 27>}, {pipeline_mode = #tpu.pipeline_mode<synchronous>, transform_indices = @transform_2, window_bounds = array<i64: 16, 1>}, {transform_indices = @transform_3, window_bounds = array<i64: 1, 16, 128>}]} {
    %c0 = arith.constant 0 : index
    %c0_0 = arith.constant 0 : index
    %0 = vector.load %arg3[%c0, %c0_0] : memref<16x27xbf16, #tpu.memory_space<vmem>>, vector<16x27xbf16>
    %c0_1 = arith.constant 0 : index
    %c0_2 = arith.constant 0 : index
    %c0_3 = arith.constant 0 : index
    %1 = vector.load %arg2[%c0_1, %c0_2, %c0_3] : memref<1x27x128xbf16, #tpu.memory_space<vmem>>, vector<1x27x128xbf16>
    %2 = vector.shape_cast %1 : vector<1x27x128xbf16> to vector<27x128xbf16>
    %cst = arith.constant dense<0.000000e+00> : vector<16x128xf32>
    %3 = tpu.matmul %0, %2, %cst {dimension_numbers = #tpu.dot_dimension_numbers<[1], [0], [0], [1], [0, 0, 1, 1], [], []>} : vector<16x27xbf16>, vector<27x128xbf16>, vector<16x128xf32> -> vector<16x128xf32>
    %c0_4 = arith.constant 0 : index
    %c0_5 = arith.constant 0 : index
    %4 = vector.load %arg4[%c0_4, %c0_5] : memref<16x1xf32, #tpu.memory_space<vmem>>, vector<16x1xf32>
    %5 = vector.broadcast %4 : vector<16x1xf32> to vector<16x128xf32>
    %6 = arith.addf %3, %5 : vector<16x128xf32>
    %7 = arith.mulf %6, %6 : vector<16x128xf32>
    %cst_6 = arith.constant dense<0.000000e+00> : vector<128xf32>
    %8 = vector.multi_reduction <add>, %7, %cst_6 [0] : vector<16x128xf32> to vector<128xf32>
    %9 = vector.shape_cast %8 : vector<128xf32> to vector<1x128xf32>
    %10 = math.sqrt %9 : vector<1x128xf32>
    %cst_7 = arith.constant 9.99999993E-9 : f32
    %11 = vector.broadcast %cst_7 : f32 to vector<1x128xf32>
    %12 = arith.addf %10, %11 : vector<1x128xf32>
    %cst_8 = arith.constant 1.000000e+00 : f32
    %13 = vector.broadcast %cst_8 : f32 to vector<1x128xf32>
    %14 = arith.divf %13, %12 : vector<1x128xf32>
    %15 = vector.broadcast %14 : vector<1x128xf32> to vector<16x128xf32>
    %16 = arith.mulf %6, %15 : vector<16x128xf32>
    %17 = arith.truncf %16 : vector<16x128xf32> to vector<16x128xbf16>
    %c0_9 = arith.constant 0 : index
    %c0_10 = arith.constant 0 : index
    %c0_11 = arith.constant 0 : index
    %18 = vector.load %arg5[%c0_9, %c0_10, %c0_11] : memref<1x16x128xbf16, #tpu.memory_space<vmem>>, vector<1x16x128xbf16>
    %19 = vector.shape_cast %18 : vector<1x16x128xbf16> to vector<16x128xbf16>
    %20 = vector.shape_cast %17 : vector<16x128xbf16> to vector<1x16x128xbf16>
    tpu.vector_store %arg5[%c0_9, %c0_10, %c0_11], %20 {strides = array<i32>} : memref<1x16x128xbf16, #tpu.memory_space<vmem>>, vector<1x16x128xbf16>,
    return
  }
  func.func @transform_0(%arg0: i32, %arg1: i32) -> (i32, i32, i32) {
    %c0_i32 = arith.constant 0 : i32
    %c0_i32_0 = arith.constant 0 : i32
    return %arg0, %c0_i32, %arg1 : i32, i32, i32
  }
  func.func @transform_1(%arg0: i32, %arg1: i32) -> (i32, i32) {
    %c0_i32 = arith.constant 0 : i32
    %c0_i32_0 = arith.constant 0 : i32
    %c0_i32_1 = arith.constant 0 : i32
    return %c0_i32, %c0_i32_0 : i32, i32
  }
  func.func @transform_2(%arg0: i32, %arg1: i32) -> (i32, i32) {
    %c0_i32 = arith.constant 0 : i32
    %c0_i32_0 = arith.constant 0 : i32
    %c0_i32_1 = arith.constant 0 : i32
    return %c0_i32, %c0_i32_0 : i32, i32
  }
  func.func @transform_3(%arg0: i32, %arg1: i32) -> (i32, i32, i32) {
    %c0_i32 = arith.constant 0 : i32
    %c0_i32_0 = arith.constant 0 : i32
    return %arg0, %c0_i32, %arg1 : i32, i32, i32
  }
}

module attributes {stable_mosaic.version = 11 : i64} {
  func.func @_conv_stem_kernel(%arg0: i32, %arg1: i32, %arg2: memref<1x27x128xbf16, #tpu.memory_space<vmem>>, %arg3: memref<16x27xbf16, #tpu.memory_space<vmem>>, %arg4: memref<16x1xf32, #tpu.memory_space<vmem>>, %arg5: memref<1x16x128xbf16, #tpu.memory_space<vmem>>) attributes {dimension_semantics = [#tpu.dimension_semantics<parallel>, #tpu.dimension_semantics<parallel>], iteration_bounds = array<i64: 6, 1>, scalar_prefetch = 0 : i64, scratch_operands = 0 : i64, tpu.core_type = #tpu.core_type<tc>, window_params = [{transform_indices = @transform_0, window_bounds = array<i64: 1, 27, 128>}, {pipeline_mode = #tpu.pipeline_mode<synchronous>, transform_indices = @transform_1, window_bounds = array<i64: 16, 27>}, {pipeline_mode = #tpu.pipeline_mode<synchronous>, transform_indices = @transform_2, window_bounds = array<i64: 16, 1>}, {transform_indices = @transform_3, window_bounds = array<i64: 1, 16, 128>}]} {
    %c0 = arith.constant 0 : index
    %c0_0 = arith.constant 0 : index
    %0 = vector.load %arg3[%c0, %c0_0] : memref<16x27xbf16, #tpu.memory_space<vmem>>, vector<16x27xbf16>
    %c0_1 = arith.constant 0 : index
    %c0_2 = arith.constant 0 : index
    %c0_3 = arith.constant 0 : index
    %1 = vector.load %arg2[%c0_1, %c0_2, %c0_3] : memref<1x27x128xbf16, #tpu.memory_space<vmem>>, vector<1x27x128xbf16>
    %2 = vector.shape_cast %1 : vector<1x27x128xbf16> to vector<27x128xbf16>
    %cst = arith.constant dense<0.000000e+00> : vector<16x128xf32>
    %3 = tpu.matmul %0, %2, %cst {dimension_numbers = #tpu.dot_dimension_numbers<[1], [0], [0], [1], [0, 0, 1, 1], [], []>} : vector<16x27xbf16>, vector<27x128xbf16>, vector<16x128xf32> -> vector<16x128xf32>
    %c0_4 = arith.constant 0 : index
    %c0_5 = arith.constant 0 : index
    %4 = vector.load %arg4[%c0_4, %c0_5] : memref<16x1xf32, #tpu.memory_space<vmem>>, vector<16x1xf32>
    %5 = vector.broadcast %4 : vector<16x1xf32> to vector<16x128xf32>
    %6 = arith.addf %3, %5 : vector<16x128xf32>
    %7 = arith.mulf %6, %6 : vector<16x128xf32>
    %cst_6 = arith.constant dense<0.000000e+00> : vector<128xf32>
    %8 = vector.multi_reduction <add>, %7, %cst_6 [0] : vector<16x128xf32> to vector<128xf32>
    %9 = vector.shape_cast %8 : vector<128xf32> to vector<1x128xf32>
    %10 = math.sqrt %9 : vector<1x128xf32>
    %cst_7 = arith.constant 9.99999993E-9 : f32
    %11 = vector.broadcast %cst_7 : f32 to vector<1x128xf32>
    %12 = arith.addf %10, %11 : vector<1x128xf32>
    %cst_8 = arith.constant 1.000000e+00 : f32
    %13 = vector.broadcast %cst_8 : f32 to vector<1x128xf32>
    %14 = arith.divf %13, %12 : vector<1x128xf32>
    %15 = vector.broadcast %14 : vector<1x128xf32> to vector<16x128xf32>
    %16 = arith.mulf %6, %15 : vector<16x128xf32>
    %17 = arith.truncf %16 : vector<16x128xf32> to vector<16x128xbf16>
    %c0_9 = arith.constant 0 : index
    %c0_10 = arith.constant 0 : index
    %c0_11 = arith.constant 0 : index
    %18 = vector.load %arg5[%c0_9, %c0_10, %c0_11] : memref<1x16x128xbf16, #tpu.memory_space<vmem>>, vector<1x16x128xbf16>
    %19 = vector.shape_cast %18 : vector<1x16x128xbf16> to vector<16x128xbf16>
    %20 = vector.shape_cast %17 : vector<16x128xbf16> to vector<1x16x128xbf16>
    tpu.vector_store %arg5[%c0_9, %c0_10, %c0_11], %20 {strides = array<i32>} : memref<1x16x128xbf16, #tpu.memory_space<vmem>>, vector<1x16x128xbf16>,
    return
  }
  func.func @transform_0(%arg0: i32, %arg1: i32) -> (i32, i32, i32) {
    %c0_i32 = arith.constant 0 : i32
    %c0_i32_0 = arith.constant 0 : i32
    return %arg0, %c0_i32, %arg1 : i32, i32, i32
  }
  func.func @transform_1(%arg0: i32, %arg1: i32) -> (i32, i32) {
    %c0_i32 = arith.constant 0 : i32
    %c0_i32_0 = arith.constant 0 : i32
    %c0_i32_1 = arith.constant 0 : i32
    return %c0_i32, %c0_i32_0 : i32, i32
  }
  func.func @transform_2(%arg0: i32, %arg1: i32) -> (i32, i32) {
    %c0_i32 = arith.constant 0 : i32
    %c0_i32_0 = arith.constant 0 : i32
    %c0_i32_1 = arith.constant 0 : i32
    return %c0_i32, %c0_i32_0 : i32, i32
  }
  func.func @transform_3(%arg0: i32, %arg1: i32) -> (i32, i32, i32) {
    %c0_i32 = arith.constant 0 : i32
    %c0_i32_0 = arith.constant 0 : i32
    return %arg0, %c0_i32, %arg1 : i32, i32, i32
  }
}

module attributes {stable_mosaic.version = 11 : i64} {
  func.func @_qk_vals_kernel(%arg0: i32, %arg1: i32, %arg2: memref<8x16xbf16, #tpu.memory_space<vmem>>, %arg3: memref<1x16x64xbf16, #tpu.memory_space<vmem>>, %arg4: memref<1x8x64xf32, #tpu.memory_space<vmem>>) attributes {dimension_semantics = [#tpu.dimension_semantics<parallel>, #tpu.dimension_semantics<parallel>], iteration_bounds = array<i64: 4, 1>, scalar_prefetch = 0 : i64, scratch_operands = 0 : i64, tpu.core_type = #tpu.core_type<tc>, window_params = [{pipeline_mode = #tpu.pipeline_mode<synchronous>, transform_indices = @transform_0, window_bounds = array<i64: 8, 16>}, {transform_indices = @transform_1, window_bounds = array<i64: 1, 16, 64>}, {transform_indices = @transform_2, window_bounds = array<i64: 1, 8, 64>}]} {
    %c0 = arith.constant 0 : index
    %c0_0 = arith.constant 0 : index
    %0 = vector.load %arg2[%c0, %c0_0] : memref<8x16xbf16, #tpu.memory_space<vmem>>, vector<8x16xbf16>
    %c0_1 = arith.constant 0 : index
    %c0_2 = arith.constant 0 : index
    %c0_3 = arith.constant 0 : index
    %1 = vector.load %arg3[%c0_1, %c0_2, %c0_3] : memref<1x16x64xbf16, #tpu.memory_space<vmem>>, vector<1x16x64xbf16>
    %2 = vector.shape_cast %1 : vector<1x16x64xbf16> to vector<16x64xbf16>
    %cst = arith.constant dense<0.000000e+00> : vector<8x64xf32>
    %3 = tpu.matmul %0, %2, %cst {dimension_numbers = #tpu.dot_dimension_numbers<[1], [0], [0], [1], [0, 0, 1, 1], [], []>} : vector<8x16xbf16>, vector<16x64xbf16>, vector<8x64xf32> -> vector<8x64xf32>
    %cst_4 = arith.constant 2.000000e+01 : f32
    %4 = vector.broadcast %cst_4 : f32 to vector<8x64xf32>
    %5 = arith.mulf %3, %4 : vector<8x64xf32>
    %c0_5 = arith.constant 0 : index
    %c0_6 = arith.constant 0 : index
    %c0_7 = arith.constant 0 : index
    %6 = vector.load %arg4[%c0_5, %c0_6, %c0_7] : memref<1x8x64xf32, #tpu.memory_space<vmem>>, vector<1x8x64xf32>
    %7 = vector.shape_cast %6 : vector<1x8x64xf32> to vector<8x64xf32>
    %8 = vector.shape_cast %5 : vector<8x64xf32> to vector<1x8x64xf32>
    tpu.vector_store %arg4[%c0_5, %c0_6, %c0_7], %8 {strides = array<i32>} : memref<1x8x64xf32, #tpu.memory_space<vmem>>, vector<1x8x64xf32>,
    return
  }
  func.func @transform_0(%arg0: i32, %arg1: i32) -> (i32, i32) {
    %c0_i32 = arith.constant 0 : i32
    %c0_i32_0 = arith.constant 0 : i32
    %c0_i32_1 = arith.constant 0 : i32
    return %c0_i32, %c0_i32_0 : i32, i32
  }
  func.func @transform_1(%arg0: i32, %arg1: i32) -> (i32, i32, i32) {
    %c0_i32 = arith.constant 0 : i32
    %c0_i32_0 = arith.constant 0 : i32
    return %arg0, %c0_i32, %arg1 : i32, i32, i32
  }
  func.func @transform_2(%arg0: i32, %arg1: i32) -> (i32, i32, i32) {
    %c0_i32 = arith.constant 0 : i32
    %c0_i32_0 = arith.constant 0 : i32
    return %arg0, %c0_i32, %arg1 : i32, i32, i32
  }
}

module attributes {stable_mosaic.version = 11 : i64} {
  func.func @_qk_vals_kernel(%arg0: i32, %arg1: i32, %arg2: memref<8x16xbf16, #tpu.memory_space<vmem>>, %arg3: memref<1x16x8xbf16, #tpu.memory_space<vmem>>, %arg4: memref<1x8x8xf32, #tpu.memory_space<vmem>>) attributes {dimension_semantics = [#tpu.dimension_semantics<parallel>, #tpu.dimension_semantics<parallel>], iteration_bounds = array<i64: 1, 1>, scalar_prefetch = 0 : i64, scratch_operands = 0 : i64, tpu.core_type = #tpu.core_type<tc>, window_params = [{pipeline_mode = #tpu.pipeline_mode<synchronous>, transform_indices = @transform_0, window_bounds = array<i64: 8, 16>}, {transform_indices = @transform_1, window_bounds = array<i64: 1, 16, 8>}, {transform_indices = @transform_2, window_bounds = array<i64: 1, 8, 8>}]} {
    %c0 = arith.constant 0 : index
    %c0_0 = arith.constant 0 : index
    %0 = vector.load %arg2[%c0, %c0_0] : memref<8x16xbf16, #tpu.memory_space<vmem>>, vector<8x16xbf16>
    %c0_1 = arith.constant 0 : index
    %c0_2 = arith.constant 0 : index
    %c0_3 = arith.constant 0 : index
    %1 = vector.load %arg3[%c0_1, %c0_2, %c0_3] : memref<1x16x8xbf16, #tpu.memory_space<vmem>>, vector<1x16x8xbf16>
    %2 = vector.shape_cast %1 : vector<1x16x8xbf16> to vector<16x8xbf16>
    %cst = arith.constant dense<0.000000e+00> : vector<8x8xf32>
    %3 = tpu.matmul %0, %2, %cst {dimension_numbers = #tpu.dot_dimension_numbers<[1], [0], [0], [1], [0, 0, 1, 1], [], []>} : vector<8x16xbf16>, vector<16x8xbf16>, vector<8x8xf32> -> vector<8x8xf32>
    %cst_4 = arith.constant 2.000000e+01 : f32
    %4 = vector.broadcast %cst_4 : f32 to vector<8x8xf32>
    %5 = arith.mulf %3, %4 : vector<8x8xf32>
    %c0_5 = arith.constant 0 : index
    %c0_6 = arith.constant 0 : index
    %c0_7 = arith.constant 0 : index
    %6 = vector.load %arg4[%c0_5, %c0_6, %c0_7] : memref<1x8x8xf32, #tpu.memory_space<vmem>>, vector<1x8x8xf32>
    %7 = vector.shape_cast %6 : vector<1x8x8xf32> to vector<8x8xf32>
    %8 = vector.shape_cast %5 : vector<8x8xf32> to vector<1x8x8xf32>
    tpu.vector_store %arg4[%c0_5, %c0_6, %c0_7], %8 {strides = array<i32>} : memref<1x8x8xf32, #tpu.memory_space<vmem>>, vector<1x8x8xf32>,
    return
  }
  func.func @transform_0(%arg0: i32, %arg1: i32) -> (i32, i32) {
    %c0_i32 = arith.constant 0 : i32
    %c0_i32_0 = arith.constant 0 : i32
    %c0_i32_1 = arith.constant 0 : i32
    return %c0_i32, %c0_i32_0 : i32, i32
  }
  func.func @transform_1(%arg0: i32, %arg1: i32) -> (i32, i32, i32) {
    %c0_i32 = arith.constant 0 : i32
    %c0_i32_0 = arith.constant 0 : i32
    return %arg0, %c0_i32, %arg1 : i32, i32, i32
  }
  func.func @transform_2(%arg0: i32, %arg1: i32) -> (i32, i32, i32) {
    %c0_i32 = arith.constant 0 : i32
    %c0_i32_0 = arith.constant 0 : i32
    return %arg0, %c0_i32, %arg1 : i32, i32, i32
  }
}

module attributes {stable_mosaic.version = 11 : i64} {
  func.func @_softmax_ce_cm_kernel(%arg0: i32, %arg1: i32, %arg2: memref<1x8x8xf32, #tpu.memory_space<vmem>>, %arg3: memref<1x1x8xi32, #tpu.memory_space<vmem>>, %arg4: memref<1x1x8xf32, #tpu.memory_space<vmem>>) attributes {dimension_semantics = [#tpu.dimension_semantics<parallel>, #tpu.dimension_semantics<parallel>], iteration_bounds = array<i64: 1, 1>, scalar_prefetch = 0 : i64, scratch_operands = 0 : i64, tpu.core_type = #tpu.core_type<tc>, window_params = [{transform_indices = @transform_0, window_bounds = array<i64: 1, 8, 8>}, {transform_indices = @transform_1, window_bounds = array<i64: 1, 1, 8>}, {transform_indices = @transform_2, window_bounds = array<i64: 1, 1, 8>}]} {
    %c0 = arith.constant 0 : index
    %c0_0 = arith.constant 0 : index
    %c0_1 = arith.constant 0 : index
    %0 = vector.load %arg2[%c0, %c0_0, %c0_1] : memref<1x8x8xf32, #tpu.memory_space<vmem>>, vector<1x8x8xf32>
    %1 = vector.shape_cast %0 : vector<1x8x8xf32> to vector<8x8xf32>
    %c0_2 = arith.constant 0 : index
    %c0_3 = arith.constant 0 : index
    %c0_4 = arith.constant 0 : index
    %2 = vector.load %arg3[%c0_2, %c0_3, %c0_4] : memref<1x1x8xi32, #tpu.memory_space<vmem>>, vector<1x1x8xi32>
    %3 = vector.shape_cast %2 : vector<1x1x8xi32> to vector<1x8xi32>
    %cst = arith.constant dense<0xFF800000> : vector<8xf32>
    %4 = vector.multi_reduction <maximumf>, %1, %cst [0] : vector<8x8xf32> to vector<8xf32>
    %5 = vector.shape_cast %4 : vector<8xf32> to vector<1x8xf32>
    %6 = vector.broadcast %5 : vector<1x8xf32> to vector<8x8xf32>
    %7 = arith.subf %1, %6 : vector<8x8xf32>
    %8 = math.exp %7 : vector<8x8xf32>
    %cst_5 = arith.constant dense<0.000000e+00> : vector<8xf32>
    %9 = vector.multi_reduction <add>, %8, %cst_5 [0] : vector<8x8xf32> to vector<8xf32>
    %10 = vector.shape_cast %9 : vector<8xf32> to vector<1x8xf32>
    %11 = math.log %10 : vector<1x8xf32>
    %12 = arith.addf %11, %5 : vector<1x8xf32>
    %13 = tpu.iota {dimensions = array<i32: 0>} : vector<8x8xi32>
    %14 = vector.broadcast %3 : vector<1x8xi32> to vector<8x8xi32>
    %15 = arith.cmpi eq, %13, %14 : vector<8x8xi32>
    %cst_6 = arith.constant 0.000000e+00 : f32
    %16 = vector.broadcast %cst_6 : f32 to vector<8x8xf32>
    %17 = arith.select %15, %1, %16 : vector<8x8xi1>, vector<8x8xf32>
    %cst_7 = arith.constant dense<0.000000e+00> : vector<8xf32>
    %18 = vector.multi_reduction <add>, %17, %cst_7 [0] : vector<8x8xf32> to vector<8xf32>
    %19 = vector.shape_cast %18 : vector<8xf32> to vector<1x8xf32>
    %20 = arith.subf %12, %19 : vector<1x8xf32>
    %c0_8 = arith.constant 0 : index
    %c0_9 = arith.constant 0 : index
    %c0_10 = arith.constant 0 : index
    %21 = vector.load %arg4[%c0_8, %c0_9, %c0_10] : memref<1x1x8xf32, #tpu.memory_space<vmem>>, vector<1x1x8xf32>
    %22 = vector.shape_cast %21 : vector<1x1x8xf32> to vector<1x8xf32>
    %23 = vector.shape_cast %20 : vector<1x8xf32> to vector<1x1x8xf32>
    tpu.vector_store %arg4[%c0_8, %c0_9, %c0_10], %23 {strides = array<i32>} : memref<1x1x8xf32, #tpu.memory_space<vmem>>, vector<1x1x8xf32>,
    return
  }
  func.func @transform_0(%arg0: i32, %arg1: i32) -> (i32, i32, i32) {
    %c0_i32 = arith.constant 0 : i32
    %c0_i32_0 = arith.constant 0 : i32
    return %arg0, %c0_i32, %arg1 : i32, i32, i32
  }
  func.func @transform_1(%arg0: i32, %arg1: i32) -> (i32, i32, i32) {
    %c0_i32 = arith.constant 0 : i32
    %c0_i32_0 = arith.constant 0 : i32
    return %arg0, %c0_i32, %arg1 : i32, i32, i32
  }
  func.func @transform_2(%arg0: i32, %arg1: i32) -> (i32, i32, i32) {
    %c0_i32 = arith.constant 0 : i32
    %c0_i32_0 = arith.constant 0 : i32
    return %arg0, %c0_i32, %arg1 : i32, i32, i32
  }
}

module attributes {stable_mosaic.version = 11 : i64} {
  func.func @_softmax_ce_cm_kernel(%arg0: i32, %arg1: i32, %arg2: memref<1x8x64xf32, #tpu.memory_space<vmem>>, %arg3: memref<1x1x64xi32, #tpu.memory_space<vmem>>, %arg4: memref<1x1x64xf32, #tpu.memory_space<vmem>>) attributes {dimension_semantics = [#tpu.dimension_semantics<parallel>, #tpu.dimension_semantics<parallel>], iteration_bounds = array<i64: 2, 1>, scalar_prefetch = 0 : i64, scratch_operands = 0 : i64, tpu.core_type = #tpu.core_type<tc>, window_params = [{transform_indices = @transform_0, window_bounds = array<i64: 1, 8, 64>}, {transform_indices = @transform_1, window_bounds = array<i64: 1, 1, 64>}, {transform_indices = @transform_2, window_bounds = array<i64: 1, 1, 64>}]} {
    %c0 = arith.constant 0 : index
    %c0_0 = arith.constant 0 : index
    %c0_1 = arith.constant 0 : index
    %0 = vector.load %arg2[%c0, %c0_0, %c0_1] : memref<1x8x64xf32, #tpu.memory_space<vmem>>, vector<1x8x64xf32>
    %1 = vector.shape_cast %0 : vector<1x8x64xf32> to vector<8x64xf32>
    %c0_2 = arith.constant 0 : index
    %c0_3 = arith.constant 0 : index
    %c0_4 = arith.constant 0 : index
    %2 = vector.load %arg3[%c0_2, %c0_3, %c0_4] : memref<1x1x64xi32, #tpu.memory_space<vmem>>, vector<1x1x64xi32>
    %3 = vector.shape_cast %2 : vector<1x1x64xi32> to vector<1x64xi32>
    %cst = arith.constant dense<0xFF800000> : vector<64xf32>
    %4 = vector.multi_reduction <maximumf>, %1, %cst [0] : vector<8x64xf32> to vector<64xf32>
    %5 = vector.shape_cast %4 : vector<64xf32> to vector<1x64xf32>
    %6 = vector.broadcast %5 : vector<1x64xf32> to vector<8x64xf32>
    %7 = arith.subf %1, %6 : vector<8x64xf32>
    %8 = math.exp %7 : vector<8x64xf32>
    %cst_5 = arith.constant dense<0.000000e+00> : vector<64xf32>
    %9 = vector.multi_reduction <add>, %8, %cst_5 [0] : vector<8x64xf32> to vector<64xf32>
    %10 = vector.shape_cast %9 : vector<64xf32> to vector<1x64xf32>
    %11 = math.log %10 : vector<1x64xf32>
    %12 = arith.addf %11, %5 : vector<1x64xf32>
    %13 = tpu.iota {dimensions = array<i32: 0>} : vector<8x64xi32>
    %14 = vector.broadcast %3 : vector<1x64xi32> to vector<8x64xi32>
    %15 = arith.cmpi eq, %13, %14 : vector<8x64xi32>
    %cst_6 = arith.constant 0.000000e+00 : f32
    %16 = vector.broadcast %cst_6 : f32 to vector<8x64xf32>
    %17 = arith.select %15, %1, %16 : vector<8x64xi1>, vector<8x64xf32>
    %cst_7 = arith.constant dense<0.000000e+00> : vector<64xf32>
    %18 = vector.multi_reduction <add>, %17, %cst_7 [0] : vector<8x64xf32> to vector<64xf32>
    %19 = vector.shape_cast %18 : vector<64xf32> to vector<1x64xf32>
    %20 = arith.subf %12, %19 : vector<1x64xf32>
    %c0_8 = arith.constant 0 : index
    %c0_9 = arith.constant 0 : index
    %c0_10 = arith.constant 0 : index
    %21 = vector.load %arg4[%c0_8, %c0_9, %c0_10] : memref<1x1x64xf32, #tpu.memory_space<vmem>>, vector<1x1x64xf32>
    %22 = vector.shape_cast %21 : vector<1x1x64xf32> to vector<1x64xf32>
    %23 = vector.shape_cast %20 : vector<1x64xf32> to vector<1x1x64xf32>
    tpu.vector_store %arg4[%c0_8, %c0_9, %c0_10], %23 {strides = array<i32>} : memref<1x1x64xf32, #tpu.memory_space<vmem>>, vector<1x1x64xf32>,
    return
  }
  func.func @transform_0(%arg0: i32, %arg1: i32) -> (i32, i32, i32) {
    %c0_i32 = arith.constant 0 : i32
    %c0_i32_0 = arith.constant 0 : i32
    return %arg0, %c0_i32, %arg1 : i32, i32, i32
  }
  func.func @transform_1(%arg0: i32, %arg1: i32) -> (i32, i32, i32) {
    %c0_i32 = arith.constant 0 : i32
    %c0_i32_0 = arith.constant 0 : i32
    return %arg0, %c0_i32, %arg1 : i32, i32, i32
  }
  func.func @transform_2(%arg0: i32, %arg1: i32) -> (i32, i32, i32) {
    %c0_i32 = arith.constant 0 : i32
    %c0_i32_0 = arith.constant 0 : i32
    return %arg0, %c0_i32, %arg1 : i32, i32, i32
  }
}

</mosaic_0001>

<bundles_post_ra>
// kernel: vit_forward.8
= control target key start
LH: loop header
LB: loop body
LE: loop exit
PB: predicated region body
PF: predicated region fallthrough
CT: control target
= control target key end

     0   :  { %s524_s12 = smov 0   ;;  %s526_s13 = smov 0   ;;  %s570_s0 = inlined_call_operand.vmem [shape: bf16[2,27,128], index: 0, kind: input, shape index: {}]   ;;  %s571_s1 = inlined_call_operand.vmem [shape: bf16[16,27], index: 1, kind: input, shape index: {}]   ;;  %s572_s2 = inlined_call_operand.vmem [shape: f32[16,1], index: 2, kind: input, shape index: {}]   ;;  %s573_s3 = inlined_call_operand.vmem [shape: bf16[2,16,128], index: 3, kind: output, shape index: {}]  }
   0x1   :  { %s528_s14 = smov 0  }
   0x2 LB: > { %s25_s15 = sadd.s32 1, %s494_s13  ;;  %p407_p0 = scmp.ge.s32.totalorder %s498_s14, 1  ;;  %s498_s14 = sphi %s528_s14, %s13_s14   ;;  %s494_s13 = sphi %s526_s13, %s575_s13   ;;  %s490_s12 = sphi %s524_s12, %s574_s12  }
   0x3   : > { %p27_p1 = scmp.ge.s32.totalorder %s25_s15, 2  ;;  %p156_p2 = scmp.lt.s32.totalorder %s498_s14, 3 }
   0x5   : > { %s577_s15 = smov (%p27_p1, %s25_s15), 0  ;;  %p157_p3 = pnand %p407_p0, %p156_p2 }
   0x6   : > { %p186_p4 = scmp.lt.s32.totalorder (!%p157_p3), %s490_s12, 1  ;;  %vm241_vm0 = vcmask (!%p157_p3), 1044480   ;;  %v500_v0 = vmov (!%p157_p3), 0.0   ;;  %vm501_vm1 = vmmov (!%p157_p3), 0   ;;  %v209_v1 = vld [vmem:[%s572_s2] sm:$0xff] (!%p157_p3)  ;;  %vm242_vm2 = vcmask (!%p157_p3), 1045504  }
   0x7   : > { %160 = sbr.rel (%p157_p3) target bundleno = 290 (0x122), region = 32  ;;  %432 = vmatprep.subr.bf16.mxu0 (!%p157_p3), %v500_v0  ;;  %436 = vmatprep.mubr.msk.bf16.mxu0 (!%p157_p3), %vm501_vm1, %v500_v0  ;;  %v502_v2 = vmov (!%p157_p3), 65535   ;;  %v503_v4 = vmov (!%p157_p3), 0   ;;  %v210_v5 = vld [vmem:[%s572_s2 + $0x8] sm:$0xff] (!%p157_p3)  ;;  %v471_v10 = vld [vmem:[%s571_s1] sm:$0xff] (!%p157_p3)   ;;  %vm237_vm3 = vcmask (!%p157_p3), 220160  }
   0x8   : > { %v243_v3 = vsel (!%p157_p3), %vm241_vm0, 4294967295, %v502_v2  ;;  %468 = vset.pattern.permute.xlu0 (!%p157_p3), %v503_v4 }
   0x9   : > { %213 = vperm.xlu0 (!%p157_p3), %468, %v209_v1   ;;  %v244_v7 = vsel (!%p157_p3), %vm242_vm2, %v243_v3, 0 }
   0xd   : > { %218 = vperm.xlu0 (!%p157_p3), %468, %v210_v5  }
   0xe   : > { %s579_s12 = smov (!%p186_p4, %s490_s12), 1 }
   0xf   : > { %s420_s18 = sshll.u32 %s579_s12, 4  ;;  %s421_s26 = sshll.u32 %s579_s12, 3 }
  0x10   : > { %s193_s21 = scalar_lea.vmem %s570_s0, %s420_s18  ;;  %s201_s29 = scalar_lea.vmem %s573_s3, %s421_s26 }
  0x11   : > { %v469_v6 = vld [vmem:[%s193_s21] sm:$0xff]   ;;  %v470_v8 = vld [vmem:[%s193_s21 + $0x8] sm:$0x3f]  }
  0x12   : > { %433 = vmatpush3.bf16.msra.mxu0 %v469_v6  ;;  %v246_v9 = vand.u32 %v470_v8, %v244_v7 }
  0x13   : > { %434 = vmatprep.subr.bf16.mxu0 %v500_v0 }
  0x16   : > { %435 = vmatpush3.bf16.msra.mxu0 %v246_v9 }
  0x19   : > { %437 = vmatmul.mubr.msk.bf16.vlgmr.msra.gmra.mrb[0].mxu0 %vm237_vm3, %v471_v10 }
  0x88   : > { %v214_v11 = vpop.permute.xlu0 %213 }
  0x8c   : > { %v219_v15 = vpop.permute.xlu0 %218 }
  0xec   : > { %v282_v12 = vpop.f32.mrb[0].mxu0 }
  0xed   : > { %v283_v13 = vadd.f32 %v282_v12, %v214_v11  ;;  %v438_v14 = vpop.f32.mrb[1].mxu0 }
  0xee   : > { %v285_v16 = vpop.f32.mrb[2].mxu0 }
  0xef   : > { %v286_v17 = vadd.f32 %v285_v16, %v219_v15  ;;  %v439_v18 = vpop.f32.mrb[3].mxu0  ;;  %v289_v19 = vmul.f32 %v283_v13, %v283_v13 }
  0xf1   : > { %v290_v20 = vmul.f32 %v286_v17, %v286_v17 }
  0xf3   : > { %v291_v21 = vadd.f32 %v290_v20, %v289_v19 }
  0xf5   : > { %v292_v22 = vrot.slane %v291_v21, 4 }
  0xf7   : > { %v293_v23 = vadd.f32 %v292_v22, %v291_v21 }
  0xf9   : > { %v294_v24 = vrot.slane %v293_v23, 2 }
  0xfb   : > { %v295_v25 = vadd.f32 %v294_v24, %v293_v23 }
  0xfd   : > { %v296_v26 = vrot.slane %v295_v25, 1 }
  0xff   : > { %v297_v27 = vadd.f32 %v296_v26, %v295_v25 }
 0x101   : > { %472 = vrsqrt.f32 %v297_v27  ;;  %vm300_vm4 = vcmp.eq.f32.partialorder %v297_v27, inf  ;;  %v303_v30 = vand.u32 2147483648, %v297_v27  ;;  %vm302_vm5 = vcmp.eq.f32.partialorder %v297_v27, 0.0 }
 0x10b   : > { %v473_v28 = vpop.eup %472 }
 0x10c   : > { %v299_v29 = vmul.f32 %v473_v28, %v297_v27 }
 0x10e   : > { %v301_v31 = vsel %vm300_vm4, %v297_v27, %v299_v29 }
 0x10f   : > { %v304_v32 = vsel %vm302_vm5, %v303_v30, %v301_v31 }
 0x110   : > { %v305_v33 = vadd.f32 1e-08, %v304_v32 }
 0x112   : > { %474 = vrcp.f32 %v305_v33 }
 0x11c   : > { %v475_v34 = vpop.eup %474 }
 0x11d   : > { %v308_v35 = vmul.f32 %v475_v34, %v283_v13  ;;  %v309_v36 = vmul.f32 %v475_v34, %v286_v17 }
 0x11f   : > { %v427_v37 = vpack.c.bf16 %v309_v36, %v308_v35 }
 0x121   : > { %428 = vst [vmem:[%s201_s29] sm:$0xff] %v427_v37  }
 0x122 PF: > { %s13_s14 = sadd.s32 1, %s498_s14   ;;  %s574_s12 = smov %s494_s13 }
 0x123   : > { %p10_p5 = scmp.ge.s32.totalorder %s13_s14, 4   ;;  %s575_s13 = smov %s577_s15 }
 0x125   :  { %12 = sbr.rel (!%p10_p5) target bundleno = 2 (0x2), region = 62 }

// kernel: vit_forward.7
= control target key start
LH: loop header
LB: loop body
LE: loop exit
PB: predicated region body
PF: predicated region fallthrough
CT: control target
= control target key end

     0   :  { %s524_s12 = smov 0   ;;  %s526_s13 = smov 0   ;;  %s570_s0 = inlined_call_operand.vmem [shape: bf16[6,27,128], index: 0, kind: input, shape index: {}]   ;;  %s571_s1 = inlined_call_operand.vmem [shape: bf16[16,27], index: 1, kind: input, shape index: {}]   ;;  %s572_s2 = inlined_call_operand.vmem [shape: f32[16,1], index: 2, kind: input, shape index: {}]   ;;  %s573_s3 = inlined_call_operand.vmem [shape: bf16[6,16,128], index: 3, kind: output, shape index: {}]  }
   0x1   :  { %s528_s14 = smov 0  }
   0x2 LB: > { %s25_s15 = sadd.s32 1, %s494_s13  ;;  %p407_p0 = scmp.ge.s32.totalorder %s498_s14, 1  ;;  %s498_s14 = sphi %s528_s14, %s13_s14   ;;  %s494_s13 = sphi %s526_s13, %s575_s13   ;;  %s490_s12 = sphi %s524_s12, %s574_s12  }
   0x3   : > { %p27_p1 = scmp.ge.s32.totalorder %s25_s15, 6  ;;  %p156_p2 = scmp.lt.s32.totalorder %s498_s14, 7 }
   0x5   : > { %s577_s15 = smov (%p27_p1, %s25_s15), 0  ;;  %p157_p3 = pnand %p407_p0, %p156_p2 }
   0x6   : > { %p186_p4 = scmp.lt.s32.totalorder (!%p157_p3), %s490_s12, 5  ;;  %vm241_vm0 = vcmask (!%p157_p3), 1044480   ;;  %v500_v0 = vmov (!%p157_p3), 0.0   ;;  %vm501_vm1 = vmmov (!%p157_p3), 0   ;;  %v209_v1 = vld [vmem:[%s572_s2] sm:$0xff] (!%p157_p3)  ;;  %vm242_vm2 = vcmask (!%p157_p3), 1045504  }
   0x7   : > { %160 = sbr.rel (%p157_p3) target bundleno = 290 (0x122), region = 32  ;;  %432 = vmatprep.subr.bf16.mxu0 (!%p157_p3), %v500_v0  ;;  %436 = vmatprep.mubr.msk.bf16.mxu0 (!%p157_p3), %vm501_vm1, %v500_v0  ;;  %v502_v2 = vmov (!%p157_p3), 65535   ;;  %v503_v4 = vmov (!%p157_p3), 0   ;;  %v210_v5 = vld [vmem:[%s572_s2 + $0x8] sm:$0xff] (!%p157_p3)  ;;  %v471_v10 = vld [vmem:[%s571_s1] sm:$0xff] (!%p157_p3)   ;;  %vm237_vm3 = vcmask (!%p157_p3), 220160  }
   0x8   : > { %v243_v3 = vsel (!%p157_p3), %vm241_vm0, 4294967295, %v502_v2  ;;  %468 = vset.pattern.permute.xlu0 (!%p157_p3), %v503_v4 }
   0x9   : > { %213 = vperm.xlu0 (!%p157_p3), %468, %v209_v1   ;;  %v244_v7 = vsel (!%p157_p3), %vm242_vm2, %v243_v3, 0 }
   0xd   : > { %218 = vperm.xlu0 (!%p157_p3), %468, %v210_v5  }
   0xe   : > { %s579_s12 = smov (!%p186_p4, %s490_s12), 5 }
   0xf   : > { %s420_s18 = sshll.u32 %s579_s12, 4  ;;  %s421_s26 = sshll.u32 %s579_s12, 3 }
  0x10   : > { %s193_s21 = scalar_lea.vmem %s570_s0, %s420_s18  ;;  %s201_s29 = scalar_lea.vmem %s573_s3, %s421_s26 }
  0x11   : > { %v469_v6 = vld [vmem:[%s193_s21] sm:$0xff]   ;;  %v470_v8 = vld [vmem:[%s193_s21 + $0x8] sm:$0x3f]  }
  0x12   : > { %433 = vmatpush3.bf16.msra.mxu0 %v469_v6  ;;  %v246_v9 = vand.u32 %v470_v8, %v244_v7 }
  0x13   : > { %434 = vmatprep.subr.bf16.mxu0 %v500_v0 }
  0x16   : > { %435 = vmatpush3.bf16.msra.mxu0 %v246_v9 }
  0x19   : > { %437 = vmatmul.mubr.msk.bf16.vlgmr.msra.gmra.mrb[0].mxu0 %vm237_vm3, %v471_v10 }
  0x88   : > { %v214_v11 = vpop.permute.xlu0 %213 }
  0x8c   : > { %v219_v15 = vpop.permute.xlu0 %218 }
  0xec   : > { %v282_v12 = vpop.f32.mrb[0].mxu0 }
  0xed   : > { %v283_v13 = vadd.f32 %v282_v12, %v214_v11  ;;  %v438_v14 = vpop.f32.mrb[1].mxu0 }
  0xee   : > { %v285_v16 = vpop.f32.mrb[2].mxu0 }
  0xef   : > { %v286_v17 = vadd.f32 %v285_v16, %v219_v15  ;;  %v439_v18 = vpop.f32.mrb[3].mxu0  ;;  %v289_v19 = vmul.f32 %v283_v13, %v283_v13 }
  0xf1   : > { %v290_v20 = vmul.f32 %v286_v17, %v286_v17 }
  0xf3   : > { %v291_v21 = vadd.f32 %v290_v20, %v289_v19 }
  0xf5   : > { %v292_v22 = vrot.slane %v291_v21, 4 }
  0xf7   : > { %v293_v23 = vadd.f32 %v292_v22, %v291_v21 }
  0xf9   : > { %v294_v24 = vrot.slane %v293_v23, 2 }
  0xfb   : > { %v295_v25 = vadd.f32 %v294_v24, %v293_v23 }
  0xfd   : > { %v296_v26 = vrot.slane %v295_v25, 1 }
  0xff   : > { %v297_v27 = vadd.f32 %v296_v26, %v295_v25 }
 0x101   : > { %472 = vrsqrt.f32 %v297_v27  ;;  %vm300_vm4 = vcmp.eq.f32.partialorder %v297_v27, inf  ;;  %v303_v30 = vand.u32 2147483648, %v297_v27  ;;  %vm302_vm5 = vcmp.eq.f32.partialorder %v297_v27, 0.0 }
 0x10b   : > { %v473_v28 = vpop.eup %472 }
 0x10c   : > { %v299_v29 = vmul.f32 %v473_v28, %v297_v27 }
 0x10e   : > { %v301_v31 = vsel %vm300_vm4, %v297_v27, %v299_v29 }
 0x10f   : > { %v304_v32 = vsel %vm302_vm5, %v303_v30, %v301_v31 }
 0x110   : > { %v305_v33 = vadd.f32 1e-08, %v304_v32 }
 0x112   : > { %474 = vrcp.f32 %v305_v33 }
 0x11c   : > { %v475_v34 = vpop.eup %474 }
 0x11d   : > { %v308_v35 = vmul.f32 %v475_v34, %v283_v13  ;;  %v309_v36 = vmul.f32 %v475_v34, %v286_v17 }
 0x11f   : > { %v427_v37 = vpack.c.bf16 %v309_v36, %v308_v35 }
 0x121   : > { %428 = vst [vmem:[%s201_s29] sm:$0xff] %v427_v37  }
 0x122 PF: > { %s13_s14 = sadd.s32 1, %s498_s14   ;;  %s574_s12 = smov %s494_s13 }
 0x123   : > { %p10_p5 = scmp.ge.s32.totalorder %s13_s14, 8   ;;  %s575_s13 = smov %s577_s15 }
 0x125   :  { %12 = sbr.rel (!%p10_p5) target bundleno = 2 (0x2), region = 62 }

// kernel: vit_forward.14
= control target key start
LH: loop header
LB: loop body
LE: loop exit
PB: predicated region body
PF: predicated region fallthrough
CT: control target
= control target key end

     0   :  { %s396_s9 = smov 0   ;;  %s398_s10 = smov 0   ;;  %s429_s0 = inlined_call_operand.vmem [shape: bf16[8,16], index: 0, kind: input, shape index: {}]   ;;  %s430_s1 = inlined_call_operand.vmem [shape: bf16[4,16,64], index: 1, kind: input, shape index: {}]   ;;  %s431_s2 = inlined_call_operand.vmem [shape: f32[4,8,64], index: 2, kind: output, shape index: {}]  }
   0x1   :  { %s400_s11 = smov 0  }
   0x2 LB: > { %s24_s12 = sadd.s32 1, %s373_s10  ;;  %p311_p0 = scmp.ge.s32.totalorder %s377_s11, 1  ;;  %s377_s11 = sphi %s400_s11, %s12_s11   ;;  %s373_s10 = sphi %s398_s10, %s433_s10   ;;  %s369_s9 = sphi %s396_s9, %s432_s9  }
   0x3   : > { %p26_p1 = scmp.ge.s32.totalorder %s24_s12, 4  ;;  %p131_p2 = scmp.lt.s32.totalorder %s377_s11, 5 }
   0x5   : > { %s435_s12 = smov (%p26_p1, %s24_s12), 0  ;;  %p132_p3 = pnand %p311_p0, %p131_p2 }
   0x6   : > { %p158_p4 = scmp.lt.s32.totalorder (!%p132_p3), %s369_s9, 3  ;;  %v379_v0 = vmov (!%p132_p3), 0.0   ;;  %vm380_vm0 = vmmov (!%p132_p3), 0   ;;  %v174_v2 = vld [vmem:[%s429_s0] sm:$0xf] (!%p132_p3)  ;;  %vm183_vm1 = vcmask (!%p132_p3), 130048  }
   0x7   : > { %135 = sbr.rel (%p132_p3) target bundleno = 236 (0xec), region = 28  ;;  %322 = vmatprep.subr.bf16.mxu0 (!%p132_p3), %v379_v0  ;;  %324 = vmatprep.mubr.msk.bf16.mxu0 (!%p132_p3), %vm380_vm0, %v379_v0  ;;  %vm228_vm2 = vcmask (!%p132_p3), 523264  }
   0xe   : > { %s437_s9 = smov (!%p158_p4, %s369_s9), 3 }
   0xf   : > { %s319_s13 = sshll.u32 %s437_s9, 3 }
  0x10   : > { %s165_s16 = scalar_lea.vmem %s430_s1, %s319_s13  ;;  %s172_s21 = scalar_lea.vmem %s431_s2, %s319_s13 }
  0x11   : > { %v354_v1 = vld [vmem:[%s165_s16] sm:$0xff]  }
  0x12   : > { %323 = vmatpush3.bf16.msra.mxu0 %v354_v1 }
  0x15   : > { %325 = vmatmul.mubr.msk.bf16.vlgmr.msra.gmra.mrb[0].mxu0 %vm183_vm1, %v174_v2 }
  0xe8   : > { %v221_v3 = vpop.f32.mrb[0].mxu0 }
  0xe9   : > { %v227_v4 = vmul.f32 20.0, %v221_v3  ;;  %v326_v5 = vpop.f32.mrb[1].mxu0 }
  0xea   : > { %v224_v6 = vpop.f32.mrb[2].mxu0 }
  0xeb   : > { %229 = vst.msk [vmem:[%s172_s21] sm:$0xff] %vm228_vm2, %v227_v4  ;;  %v327_v7 = vpop.f32.mrb[3].mxu0 }
  0xec PF: > { %s12_s11 = sadd.s32 1, %s377_s11   ;;  %s432_s9 = smov %s373_s10 }
  0xed   : > { %p9_p5 = scmp.ge.s32.totalorder %s12_s11, 6   ;;  %s433_s10 = smov %s435_s12 }
  0xef   :  { %11 = sbr.rel (!%p9_p5) target bundleno = 2 (0x2), region = 58 }

// kernel: vit_forward.9
= control target key start
LH: loop header
LB: loop body
LE: loop exit
PB: predicated region body
PF: predicated region fallthrough
CT: control target
= control target key end

     0   :  { %v85_v0 = vmov 0.0   ;;  %vm86_vm0 = vmmov 0   ;;  %vm21_vm1 = vcmask 130048   ;;  %vm66_vm2 = vcmask 64512   ;;  %s111_s1 = inlined_call_operand.vmem [shape: bf16[1,16,8], index: 1, kind: input, shape index: {}]   ;;  %s112_s0 = inlined_call_operand.vmem [shape: bf16[8,16], index: 0, kind: input, shape index: {}]   ;;  %s113_s2 = inlined_call_operand.vmem [shape: f32[1,8,8], index: 2, kind: output, shape index: {}]  }
   0x1   :  { %76 = vmatprep.subr.bf16.mxu0 %v85_v0  ;;  %v84_v1 = vld [vmem:[%s111_s1] sm:$0xff]   ;;  %78 = vmatprep.mubr.msk.bf16.mxu0 %vm86_vm0, %v85_v0 }
   0x2   :  { %77 = vmatpush3.bf16.msra.mxu0 %v84_v1  ;;  %v12_v2 = vld [vmem:[%s112_s0] sm:$0xf] }
   0x5   :  { %79 = vmatmul.mubr.msk.bf16.vlgmr.msra.gmra.mrb[0].mxu0 %vm21_vm1, %v12_v2 }
  0xd8   :  { %v59_v3 = vpop.f32.mrb[0].mxu0 }
  0xd9   :  { %v65_v4 = vmul.f32 20.0, %v59_v3  ;;  %v80_v5 = vpop.f32.mrb[1].mxu0 }
  0xda   :  { %v62_v6 = vpop.f32.mrb[2].mxu0 }
  0xdb   :  { %67 = vst.msk [vmem:[%s113_s2] sm:$0xff] %vm66_vm2, %v65_v4  ;;  %v81_v7 = vpop.f32.mrb[3].mxu0 }

// kernel: vit_forward.10
= control target key start
LH: loop header
LB: loop body
LE: loop exit
PB: predicated region body
PF: predicated region fallthrough
CT: control target
= control target key end

     0   :  { %vm13_vm0 = vcmask 64512   ;;  %v34_v10 = vlaneseq  ;;  %vm50_vm2 = vcmask 57344   ;;  %s88_s0 = inlined_call_operand.vmem [shape: f32[1,8,8], index: 0, kind: input, shape index: {}]   ;;  %s89_s1 = inlined_call_operand.vmem [shape: s32[1,1,8], index: 1, kind: input, shape index: {}]   ;;  %s90_s2 = inlined_call_operand.vmem [shape: f32[1,1,8], index: 2, kind: output, shape index: {}]  }
   0x1   :  { %v11_v0 = vld [vmem:[%s88_s0] sm:$0xff] }
   0x2   :  { %v14_v1 = vsel %vm13_vm0, %v11_v0, -inf  ;;  %v35_v11 = vshrl.u32 %v34_v10, 7  ;;  %v56_v12 = vld [vmem:[%s89_s1] ss:$0 sm:$0xff] }
   0x3   :  { %v15_v2 = vrot.slane %v14_v1, 4 }
   0x4   :  { %vm40_vm1 = vcmp.eq.s32.totalorder %v35_v11, %v56_v12 }
   0x5   :  { %v16_v3 = vmax.f32 %v14_v1, %v15_v2  ;;  %v41_v13 = vsel %vm40_vm1, %v11_v0, 0.0 }
   0x6   :  { %v42_v17 = vsel %vm13_vm0, %v41_v13, 0.0 }
   0x7   :  { %v17_v4 = vrot.slane %v16_v3, 2  ;;  %v43_v19 = vrot.slane %v42_v17, 4 }
   0x9   :  { %v18_v5 = vmax.f32 %v16_v3, %v17_v4  ;;  %v44_v22 = vadd.f32 %v43_v19, %v42_v17 }
   0xb   :  { %v19_v6 = vrot.slane %v18_v5, 1  ;;  %v45_v25 = vrot.slane %v44_v22, 2 }
   0xd   :  { %v20_v7 = vmax.f32 %v18_v5, %v19_v6  ;;  %v46_v26 = vadd.f32 %v45_v25, %v44_v22 }
   0xf   :  { %v21_v8 = vsub.f32 %v11_v0, %v20_v7  ;;  %v47_v27 = vrot.slane %v46_v26, 1 }
  0x11   :  { %v22_v9 = vmul.f32 1.442695, %v21_v8  ;;  %v48_v30 = vadd.f32 %v47_v27, %v46_v26 }
  0x13   :  { %57 = vpow2.f32 %v22_v9 }
  0x1d   :  { %v58_v14 = vpop.eup %57 }
  0x1e   :  { %v24_v15 = vsel %vm13_vm0, %v58_v14, 0.0 }
  0x1f   :  { %v25_v16 = vrot.slane %v24_v15, 4 }
  0x21   :  { %v26_v18 = vadd.f32 %v25_v16, %v24_v15 }
  0x23   :  { %v27_v20 = vrot.slane %v26_v18, 2 }
  0x25   :  { %v28_v21 = vadd.f32 %v27_v20, %v26_v18 }
  0x27   :  { %v29_v23 = vrot.slane %v28_v21, 1 }
  0x29   :  { %v30_v24 = vadd.f32 %v29_v23, %v28_v21 }
  0x2b   :  { %59 = vlog2.f32 %v30_v24 }
  0x35   :  { %v60_v28 = vpop.eup %59 }
  0x36   :  { %v32_v29 = vmul.f32 0.6931472, %v60_v28 }
  0x38   :  { %v33_v31 = vadd.f32 %v32_v29, %v20_v7 }
  0x3a   :  { %v49_v32 = vsub.f32 %v33_v31, %v48_v30 }
  0x3c   :  { %51 = vst.msk [vmem:[%s90_s2] sm:$0x1] %vm50_vm2, %v49_v32 }

// kernel: vit_forward.15
= control target key start
LH: loop header
LB: loop body
LE: loop exit
PB: predicated region body
PF: predicated region fallthrough
CT: control target
= control target key end

     0   :  { %s390_s9 = smov 0   ;;  %s392_s10 = smov 0   ;;  %s434_s0 = inlined_call_operand.vmem [shape: f32[2,8,64], index: 0, kind: input, shape index: {}]   ;;  %s435_s1 = inlined_call_operand.vmem [shape: s32[2,1,64], index: 1, kind: input, shape index: {}]   ;;  %s436_s2 = inlined_call_operand.vmem [shape: f32[2,1,64], index: 2, kind: output, shape index: {}]  }
   0x1   :  { %s394_s11 = smov 0  }
   0x2 LB: > { %s24_s12 = sadd.s32 1, %s369_s10  ;;  %p318_p0 = scmp.ge.s32.totalorder %s373_s11, 1  ;;  %s373_s11 = sphi %s394_s11, %s12_s11   ;;  %s369_s10 = sphi %s392_s10, %s438_s10   ;;  %s365_s9 = sphi %s390_s9, %s437_s9  }
   0x3   : > { %p26_p1 = scmp.ge.s32.totalorder %s24_s12, 2  ;;  %p143_p2 = scmp.lt.s32.totalorder %s373_s11, 3 }
   0x5   : > { %s440_s12 = smov (%p26_p1, %s24_s12), 0  ;;  %p144_p3 = pnand %p318_p0, %p143_p2 }
   0x6   : > { %p174_p4 = scmp.lt.s32.totalorder (!%p144_p3), %s365_s9, 1  ;;  %vm195_vm0 = vcmask (!%p144_p3), 523264   ;;  %v216_v10 = vlaneseq (!%p144_p3)  ;;  %vm232_vm2 = vcmask (!%p144_p3), 516096  }
   0x7   : > { %147 = sbr.rel (%p144_p3) target bundleno = 77 (0x4d), region = 28 }
   0x8   : > { %v217_v11 = vshrl.u32 (!%p144_p3), %v216_v10, 7 }
   0xe   : > { %s442_s9 = smov (!%p174_p4, %s365_s9), 1 }
   0xf   : > { %s319_s13 = sshll.u32 %s442_s9, 3  ;;  %s186_s19 = scalar_lea.vmem %s435_s1, %s442_s9 }
  0x10   : > { %s180_s16 = scalar_lea.vmem %s434_s0, %s319_s13  ;;  %v320_v12 = vld [vmem:[%s186_s19] ss:$0 sm:$0xff]  ;;  %s192_s22 = scalar_lea.vmem %s436_s2, %s442_s9 }
  0x11   : > { %v193_v0 = vld [vmem:[%s180_s16] sm:$0xff]  ;;  %vm222_vm1 = vcmp.eq.s32.totalorder %v217_v11, %v320_v12 }
  0x12   : > { %v196_v1 = vsel %vm195_vm0, %v193_v0, -inf  ;;  %v223_v13 = vsel %vm222_vm1, %v193_v0, 0.0 }
  0x13   : > { %v197_v2 = vrot.slane %v196_v1, 4  ;;  %v224_v17 = vsel %vm195_vm0, %v223_v13, 0.0 }
  0x14   : > { %v225_v19 = vrot.slane %v224_v17, 4 }
  0x15   : > { %v198_v3 = vmax.f32 %v196_v1, %v197_v2 }
  0x16   : > { %v226_v22 = vadd.f32 %v225_v19, %v224_v17 }
  0x17   : > { %v199_v4 = vrot.slane %v198_v3, 2 }
  0x18   : > { %v227_v25 = vrot.slane %v226_v22, 2 }
  0x19   : > { %v200_v5 = vmax.f32 %v198_v3, %v199_v4 }
  0x1a   : > { %v228_v26 = vadd.f32 %v227_v25, %v226_v22 }
  0x1b   : > { %v201_v6 = vrot.slane %v200_v5, 1 }
  0x1c   : > { %v229_v27 = vrot.slane %v228_v26, 1 }
  0x1d   : > { %v202_v7 = vmax.f32 %v200_v5, %v201_v6 }
  0x1e   : > { %v230_v30 = vadd.f32 %v229_v27, %v228_v26 }
  0x1f   : > { %v203_v8 = vsub.f32 %v193_v0, %v202_v7 }
  0x21   : > { %v204_v9 = vmul.f32 1.442695, %v203_v8 }
  0x23   : > { %347 = vpow2.f32 %v204_v9 }
  0x2d   : > { %v348_v14 = vpop.eup %347 }
  0x2e   : > { %v206_v15 = vsel %vm195_vm0, %v348_v14, 0.0 }
  0x2f   : > { %v207_v16 = vrot.slane %v206_v15, 4 }
  0x31   : > { %v208_v18 = vadd.f32 %v207_v16, %v206_v15 }
  0x33   : > { %v209_v20 = vrot.slane %v208_v18, 2 }
  0x35   : > { %v210_v21 = vadd.f32 %v209_v20, %v208_v18 }
  0x37   : > { %v211_v23 = vrot.slane %v210_v21, 1 }
  0x39   : > { %v212_v24 = vadd.f32 %v211_v23, %v210_v21 }
  0x3b   : > { %349 = vlog2.f32 %v212_v24 }
  0x45   : > { %v350_v28 = vpop.eup %349 }
  0x46   : > { %v214_v29 = vmul.f32 0.6931472, %v350_v28 }
  0x48   : > { %v215_v31 = vadd.f32 %v214_v29, %v202_v7 }
  0x4a   : > { %v231_v32 = vsub.f32 %v215_v31, %v230_v30 }
  0x4c   : > { %233 = vst.msk [vmem:[%s192_s22] sm:$0x1] %vm232_vm2, %v231_v32 }
  0x4d PF: > { %s12_s11 = sadd.s32 1, %s373_s11   ;;  %s437_s9 = smov %s369_s10 }
  0x4e   : > { %p9_p5 = scmp.ge.s32.totalorder %s12_s11, 4   ;;  %s438_s10 = smov %s440_s12 }
  0x50   :  { %11 = sbr.rel (!%p9_p5) target bundleno = 2 (0x2), region = 61 }

</bundles_post_ra>
